<compile_context>
chip_gen: v7x
topology: tpu7x:2x2x1
jax: 0.10.0
libtpu: 0.0.40
codegen_flags: <defaults>
</compile_context>

<pallas_src>
import jax
import jax.numpy as jnp
import numpy as np
from jax.experimental import pallas as pl
from jax.experimental.pallas import tpu as pltpu

# ---- small, module-consistent configuration (PyTorch defaults scaled down) ----
IMG, PATCH, C_IN, EMBED = 16, 4, 4, 32
GRID_HW = IMG // PATCH                  # 4 patches per spatial axis
N_PATCHES = GRID_HW * GRID_HW           # 16
K_ROW = PATCH * IMG                     # 64  = per-channel row-block contraction
N_PACK = GRID_HW * EMBED                # 128 = lane-dense packed output width


# ----------------------------- Pallas kernel ----------------------------------
def patch_embed_kernel(x_ref, w_ref, b_ref, o_ref):
    # x_ref: (1, C_IN, GRID_HW, PATCH*IMG)   one image, raw NCHW layout (reshaped only)
    # w_ref: (C_IN, PATCH*IMG, GRID_HW*EMBED) block-diagonal, patch-permutation absorbed
    # b_ref: (1, GRID_HW*EMBED)               bias tiled across the GRID_HW packed patches
    # o_ref: (1, GRID_HW, GRID_HW*EMBED)      lane-dense (4, 128) packed output rows
    acc = jnp.dot(x_ref[0, 0, :, :], w_ref[0, :, :],
                  preferred_element_type=jnp.float32)
    for c in range(1, C_IN):                 # static, unrolled; leading-dim slices only
        acc += jnp.dot(x_ref[0, c, :, :], w_ref[c, :, :],
                       preferred_element_type=jnp.float32)
    o_ref[0, :, :] = acc + b_ref[...]


def patch_embedding(x, w_bd, b_row):
    """x: (B, C_IN, IMG, IMG) float32 NCHW -> (B, N_PATCHES, EMBED) float32."""
    B = x.shape[0]
    # Contiguous (free) reshape of the raw NCHW tensor -- no XLA transpose,
    # no extra HBM round trip before the kernel.
    x_r = x.reshape(B, C_IN, GRID_HW, K_ROW)

    out = pl.pallas_call(
        patch_embed_kernel,
        out_shape=jax.ShapeDtypeStruct((B, GRID_HW, N_PACK), jnp.float32),
        grid=(B,),
        in_specs=[
            pl.BlockSpec((1, C_IN, GRID_HW, K_ROW), lambda b: (b, 0, 0, 0)),
            pl.BlockSpec((C_IN, K_ROW, N_PACK), lambda b: (0, 0, 0)),
            pl.BlockSpec((1, N_PACK), lambda b: (0, 0)),
        ],
        out_specs=pl.BlockSpec((1, GRID_HW, N_PACK), lambda b: (b, 0, 0)),
        compiler_params=pltpu.CompilerParams(
            dimension_semantics=("parallel",)),   # v7x: shard batch over 2 TCs
    )(x_r, w_bd, b_row)

    # (B, GRID_HW, GRID_HW*EMBED) -> (B, N_PATCHES, EMBED): contiguous, free.
    return out.reshape(B, N_PATCHES, EMBED)


# ----------------------------- parameters -------------------------------------
def init_params(key):
    k_w, k_b = jax.random.split(key)
    proj_w = 0.02 * jax.random.normal(k_w, (EMBED, C_IN, PATCH, PATCH), jnp.float32)
    proj_b = 0.02 * jax.random.normal(k_b, (EMBED,), jnp.float32)

    # Kernel-ready layouts computed ONCE (not per forward call):
    # W_bd[c, ph*IMG + gw*PATCH + pw, gw*EMBED + e] = proj_w[e, c, ph, pw]
    w_np = np.transpose(np.asarray(proj_w, np.float32), (1, 2, 3, 0))  # (C, ph, pw, E)
    w_bd = np.zeros((C_IN, K_ROW, N_PACK), np.float32)
    for ph in range(PATCH):
        for gw in range(GRID_HW):
            r0 = ph * IMG + gw * PATCH
            w_bd[:, r0:r0 + PATCH, gw * EMBED:(gw + 1) * EMBED] = w_np[:, ph, :, :]
    b_row = np.tile(np.asarray(proj_b, np.float32), GRID_HW)[None, :]  # (1, 128)

    return {"proj_w": proj_w, "proj_b": proj_b,
            "w_bd": jnp.asarray(w_bd), "b_row": jnp.asarray(b_row)}


# ----------------------------- reference (for checking) -----------------------
def reference_patch_embedding(x, proj_w, proj_b):
    # Exact Conv2d(k=stride=PATCH) + flatten(2) + transpose(1,2) in plain JAX.
    y = jax.lax.conv_general_dilated(
        x, proj_w, window_strides=(PATCH, PATCH), padding="VALID",
        dimension_numbers=("NCHW", "OIHW", "NCHW"),
    ) + proj_b.reshape(1, EMBED, 1, 1)
    B = x.shape[0]
    return y.reshape(B, EMBED, N_PATCHES).transpose(0, 2, 1)


# ----------------------------- main --------------------------------------------
if __name__ == "__main__":
    key = jax.random.PRNGKey(0)
    k_param, k_input = jax.random.split(key)
    params = init_params(k_param)

    x = jax.random.normal(k_input, (2, C_IN, IMG, IMG), jnp.float32)  # NCHW

    fwd = jax.jit(patch_embedding)
    out = jax.block_until_ready(fwd(x, params["w_bd"], params["b_row"]))

    assert out.shape == (2, N_PATCHES, EMBED) and out.dtype == jnp.float32

    ref = jax.block_until_ready(
        reference_patch_embedding(x, params["proj_w"], params["proj_b"])
    )
    assert np.allclose(np.asarray(out), np.asarray(ref), rtol=1e-4, atol=1e-4)

    print("KERNEL_OK")
</pallas_src>

<mosaic_0001>
module attributes {stable_mosaic.version = 11 : i64} {
  func.func @patch_embed_kernel(%arg0: i32, %arg1: memref<1x4x4x64xf32, #tpu.memory_space<vmem>>, %arg2: memref<4x64x128xf32, #tpu.memory_space<vmem>>, %arg3: memref<1x128xf32, #tpu.memory_space<vmem>>, %arg4: memref<1x4x128xf32, #tpu.memory_space<vmem>>) attributes {dimension_semantics = [#tpu.dimension_semantics<parallel>], iteration_bounds = array<i64: 2>, scalar_prefetch = 0 : i64, scratch_operands = 0 : i64, tpu.core_type = #tpu.core_type<tc>, window_params = [{transform_indices = @transform_0, window_bounds = array<i64: 1, 4, 4, 64>}, {pipeline_mode = #tpu.pipeline_mode<synchronous>, transform_indices = @transform_1, window_bounds = array<i64: 4, 64, 128>}, {pipeline_mode = #tpu.pipeline_mode<synchronous>, transform_indices = @transform_2, window_bounds = array<i64: 1, 128>}, {transform_indices = @transform_3, window_bounds = array<i64: 1, 4, 128>}]} {
    %c0 = arith.constant 0 : index
    %c0_0 = arith.constant 0 : index
    %c0_1 = arith.constant 0 : index
    %c0_2 = arith.constant 0 : index
    %0 = vector.load %arg1[%c0, %c0_0, %c0_1, %c0_2] : memref<1x4x4x64xf32, #tpu.memory_space<vmem>>, vector<1x1x4x64xf32>
    %1 = vector.shape_cast %0 : vector<1x1x4x64xf32> to vector<4x64xf32>
    %c0_3 = arith.constant 0 : index
    %c0_4 = arith.constant 0 : index
    %c0_5 = arith.constant 0 : index
    %2 = vector.load %arg2[%c0_3, %c0_4, %c0_5] : memref<4x64x128xf32, #tpu.memory_space<vmem>>, vector<1x64x128xf32>
    %3 = vector.shape_cast %2 : vector<1x64x128xf32> to vector<64x128xf32>
    %cst = arith.constant dense<0.000000e+00> : vector<4x128xf32>
    %4 = tpu.matmul %1, %3, %cst {dimension_numbers = #tpu.dot_dimension_numbers<[1], [0], [0], [1], [0, 0, 1, 1], [], []>} : vector<4x64xf32>, vector<64x128xf32>, vector<4x128xf32> -> vector<4x128xf32>
    %c0_6 = arith.constant 0 : index
    %c1 = arith.constant 1 : index
    %c0_7 = arith.constant 0 : index
    %c0_8 = arith.constant 0 : index
    %5 = vector.load %arg1[%c0_6, %c1, %c0_7, %c0_8] : memref<1x4x4x64xf32, #tpu.memory_space<vmem>>, vector<1x1x4x64xf32>
    %6 = vector.shape_cast %5 : vector<1x1x4x64xf32> to vector<4x64xf32>
    %c1_9 = arith.constant 1 : index
    %c0_10 = arith.constant 0 : index
    %c0_11 = arith.constant 0 : index
    %7 = vector.load %arg2[%c1_9, %c0_10, %c0_11] : memref<4x64x128xf32, #tpu.memory_space<vmem>>, vector<1x64x128xf32>
    %8 = vector.shape_cast %7 : vector<1x64x128xf32> to vector<64x128xf32>
    %cst_12 = arith.constant dense<0.000000e+00> : vector<4x128xf32>
    %9 = tpu.matmul %6, %8, %cst_12 {dimension_numbers = #tpu.dot_dimension_numbers<[1], [0], [0], [1], [0, 0, 1, 1], [], []>} : vector<4x64xf32>, vector<64x128xf32>, vector<4x128xf32> -> vector<4x128xf32>
    %10 = arith.addf %4, %9 : vector<4x128xf32>
    %c0_13 = arith.constant 0 : index
    %c2 = arith.constant 2 : index
    %c0_14 = arith.constant 0 : index
    %c0_15 = arith.constant 0 : index
    %11 = vector.load %arg1[%c0_13, %c2, %c0_14, %c0_15] : memref<1x4x4x64xf32, #tpu.memory_space<vmem>>, vector<1x1x4x64xf32>
    %12 = vector.shape_cast %11 : vector<1x1x4x64xf32> to vector<4x64xf32>
    %c2_16 = arith.constant 2 : index
    %c0_17 = arith.constant 0 : index
    %c0_18 = arith.constant 0 : index
    %13 = vector.load %arg2[%c2_16, %c0_17, %c0_18] : memref<4x64x128xf32, #tpu.memory_space<vmem>>, vector<1x64x128xf32>
    %14 = vector.shape_cast %13 : vector<1x64x128xf32> to vector<64x128xf32>
    %cst_19 = arith.constant dense<0.000000e+00> : vector<4x128xf32>
    %15 = tpu.matmul %12, %14, %cst_19 {dimension_numbers = #tpu.dot_dimension_numbers<[1], [0], [0], [1], [0, 0, 1, 1], [], []>} : vector<4x64xf32>, vector<64x128xf32>, vector<4x128xf32> -> vector<4x128xf32>
    %16 = arith.addf %10, %15 : vector<4x128xf32>
    %c0_20 = arith.constant 0 : index
    %c3 = arith.constant 3 : index
    %c0_21 = arith.constant 0 : index
    %c0_22 = arith.constant 0 : index
    %17 = vector.load %arg1[%c0_20, %c3, %c0_21, %c0_22] : memref<1x4x4x64xf32, #tpu.memory_space<vmem>>, vector<1x1x4x64xf32>
    %18 = vector.shape_cast %17 : vector<1x1x4x64xf32> to vector<4x64xf32>
    %c3_23 = arith.constant 3 : index
    %c0_24 = arith.constant 0 : index
    %c0_25 = arith.constant 0 : index
    %19 = vector.load %arg2[%c3_23, %c0_24, %c0_25] : memref<4x64x128xf32, #tpu.memory_space<vmem>>, vector<1x64x128xf32>
    %20 = vector.shape_cast %19 : vector<1x64x128xf32> to vector<64x128xf32>
    %cst_26 = arith.constant dense<0.000000e+00> : vector<4x128xf32>
    %21 = tpu.matmul %18, %20, %cst_26 {dimension_numbers = #tpu.dot_dimension_numbers<[1], [0], [0], [1], [0, 0, 1, 1], [], []>} : vector<4x64xf32>, vector<64x128xf32>, vector<4x128xf32> -> vector<4x128xf32>
    %22 = arith.addf %16, %21 : vector<4x128xf32>
    %c0_27 = arith.constant 0 : index
    %c0_28 = arith.constant 0 : index
    %23 = vector.load %arg3[%c0_27, %c0_28] : memref<1x128xf32, #tpu.memory_space<vmem>>, vector<1x128xf32>
    %24 = vector.broadcast %23 : vector<1x128xf32> to vector<4x128xf32>
    %25 = arith.addf %22, %24 : vector<4x128xf32>
    %c0_29 = arith.constant 0 : index
    %c0_30 = arith.constant 0 : index
    %c0_31 = arith.constant 0 : index
    %26 = vector.load %arg4[%c0_29, %c0_30, %c0_31] : memref<1x4x128xf32, #tpu.memory_space<vmem>>, vector<1x4x128xf32>
    %27 = vector.shape_cast %26 : vector<1x4x128xf32> to vector<4x128xf32>
    %28 = vector.shape_cast %25 : vector<4x128xf32> to vector<1x4x128xf32>
    tpu.vector_store %arg4[%c0_29, %c0_30, %c0_31], %28 {strides = array<i32>} : memref<1x4x128xf32, #tpu.memory_space<vmem>>, vector<1x4x128xf32>,
    return
  }
  func.func @transform_0(%arg0: i32) -> (i32, i32, i32, i32) {
    %c0_i32 = arith.constant 0 : i32
    %c0_i32_0 = arith.constant 0 : i32
    %c0_i32_1 = arith.constant 0 : i32
    %c0_i32_2 = arith.constant 0 : i32
    return %arg0, %c0_i32, %c0_i32_0, %c0_i32_1 : i32, i32, i32, i32
  }
  func.func @transform_1(%arg0: i32) -> (i32, i32, i32) {
    %c0_i32 = arith.constant 0 : i32
    %c0_i32_0 = arith.constant 0 : i32
    %c0_i32_1 = arith.constant 0 : i32
    %c0_i32_2 = arith.constant 0 : i32
    return %c0_i32, %c0_i32_0, %c0_i32_1 : i32, i32, i32
  }
  func.func @transform_2(%arg0: i32) -> (i32, i32) {
    %c0_i32 = arith.constant 0 : i32
    %c0_i32_0 = arith.constant 0 : i32
    %c0_i32_1 = arith.constant 0 : i32
    return %c0_i32, %c0_i32_0 : i32, i32
  }
  func.func @transform_3(%arg0: i32) -> (i32, i32, i32) {
    %c0_i32 = arith.constant 0 : i32
    %c0_i32_0 = arith.constant 0 : i32
    %c0_i32_1 = arith.constant 0 : i32
    return %arg0, %c0_i32, %c0_i32_0 : i32, i32, i32
  }
}

</mosaic_0001>

<bundles_post_ra>
// kernel: patch_embedding.1
= control target key start
LH: loop header
LB: loop body
LE: loop exit
PB: predicated region body
PF: predicated region fallthrough
CT: control target
= control target key end

     0   :  { %8 = vsyncpa [#allocation3], 0  ;;  %s866_s12 = smov 0   ;;  %s965_s0 = inlined_call_operand.vmem [shape: f32[2,4,4,64], index: 0, kind: input, shape index: {}]   ;;  %s966_s1 = inlined_call_operand.hbm [shape: f32[4,64,128], index: 1, kind: input, shape index: {}]   ;;  %s967_s2 = inlined_call_operand.vmem [shape: f32[1,128], index: 2, kind: input, shape index: {}]   ;;  %s968_s3 = inlined_call_operand.vmem [shape: f32[2,4,128], index: 3, kind: output, shape index: {}]  }
   0x1 LB: > { %s872_s13 = sadd.s32 4294967295, %s838_s12   ;;  %p597_p0 = scmp.ge.s32.totalorder %s838_s12, 1  ;;  %s838_s12 = sphi %s866_s12, %s14_s12  }
   0x2   : > { %p113_p1 = scmp.lt.s32.totalorder %s838_s12, 3  ;;  %s840_s14 = smov [#allocation2]  }
   0x3   : > { %s125_s15 = sshll.u32 %s840_s14, 4  ;;  %p969_p3 = scmp.eq.s32.totalorder %s872_s13, 0  ;;  %s126_s15 = int_to_ptr.vmem [resolvable:$true] %s125_s15 }
   0x4   : > { %p876_p2 = pnand %p597_p0, %p113_p1  ;;  %s800_s20 = scalar_lea.hbm %s966_s1, 4096 }
   0x5   : > { %p801_p6 = scmp.ne.s32.totalorder %s966_s1, %s800_s20  ;;  %p807_p10 = scmp.lt.u32.totalorder %s800_s20, %s966_s1 }
   0x6   : > { %s971_s16 = scalar_select %p876_p2, 1, 0 }
   0x7   : > { %p780_p4 = pneg %p876_p2 }
   0x9   : > { %p885_p5 = pnand %p969_p3, %p780_p4 }
   0xb   : > { %p802_p7 = pneg %p885_p5 }
   0xd   : > { %p803_p8 = pnand %p802_p7, %p801_p6 }
   0xf   : > { %p804_p9 = pneg %p803_p8 }
  0x11   : > { %p809_p11 = pnand %p807_p10, %p804_p9 }
  0x13   : > { %812 = shalt.err (!%p809_p11)
}
  0x14   : > { %s813_s25 = scalar_lea.vmem %s126_s15, 4096  ;;  %p821_p1 = scmp.lt.s32.totalorder %s126_s15, %s126_s15 }
  0x15   : > { %p814_p12 = scmp.ne.s32.totalorder %s126_s15, %s813_s25  ;;  %p822_p4 = scmp.lt.s32.totalorder %s813_s25, %s813_s25 }
  0x17   : > { %p816_p13 = pnand %p814_p12, %p802_p7  ;;  %p823_p3 = por %p822_p4, %p821_p1 }
  0x19   : > { %p817_p0 = pneg %p816_p13 }
  0x1b   : > { %p824_p2 = pnand %p823_p3, %p817_p0 }
  0x1d   : > { %827 = shalt.err (!%p824_p2)
}
  0x1e   : > { %s841_s26 = smov 128   ;;  %s842_s27 = smov 8  }
  0x1f   : > { %783 = dma.hbm_to_vmem [thread:$0]  (!%p885_p5), %s966_s1, 4096, %s126_s15, [#allocation3], %s841_s26, %s841_s26, %s842_s27  }
  0x20   : > { %p973_p6 = scmp.ne.s32.totalorder %s971_s16, 0 }
  0x21   : > { %p974_p8 = scmp.eq.s32.totalorder (!%p973_p6), %s872_s13, 0 }
  0x22   : > { %152 = sbr.rel (%p973_p6) target bundleno = 295 (0x127), region = 32 }
  0x29   : > { %833 = dma.done.wait (%p974_p8), [#allocation3], 4096   ;;  %p975_p7 = pmov %p974_p8 }
  0x2a   : > { %v843_v0 = vmov 0.0|0.0   ;;  %vm844_vm0 = vmmov 0   ;;  %v845_v1 = vmov 0.0   ;;  %v196_v2 = vld [vmem:[#allocation2 + $0x40] sm:$0xff]  ;;  %v197_v3 = vld [vmem:[#allocation2 + $0x48] sm:$0xff]  ;;  %v198_v7 = vld [vmem:[#allocation2 + $0x50] sm:$0xff] }
  0x2b   : > { %835 = vsyncadd (%p975_p7), [#allocation3], 4294963200  ;;  %728 = vmatprep.subr.bf16.mxu0 %v843_v0  ;;  %740 = vmatprep.subr.bf16.mxu1 %v843_v0  ;;  %v185_v4 = vld [vmem:[#allocation2] sm:$0xff]  ;;  %v729_v5 = vpack.c.bf16 %v197_v3, %v196_v2  ;;  %v186_v6 = vld [vmem:[#allocation2 + $0x8] sm:$0xff]  ;;  %p175_p2 = scmp.lt.s32.totalorder %s872_s13, 1  ;;  %vm204_vm1 = vcmask 523264  }
  0x2c   : > { %668 = vmatprep.mubr.msk.f32.mxu0 %vm844_vm0, %v845_v1  ;;  %687 = vmatprep.mubr.msk.f32.mxu1 %vm844_vm0, %v845_v1  ;;  %v199_v8 = vld [vmem:[#allocation2 + $0x58] sm:$0xff]  ;;  %v741_v9 = vpack.c.bf16 %v186_v6, %v185_v4  ;;  %v187_v10 = vld [vmem:[#allocation2 + $0x10] sm:$0xff]  ;;  %v200_v14 = vld [vmem:[#allocation2 + $0x60] sm:$0xff] }
  0x2d   : > { %v188_v11 = vld [vmem:[#allocation2 + $0x18] sm:$0xff]  ;;  %730 = vmatpush3.bf16.msra.mxu0 %v729_v5  ;;  %v732_v12 = vpack.c.bf16 %v199_v8, %v198_v7  ;;  %v201_v15 = vld [vmem:[#allocation2 + $0x68] sm:$0xff]  ;;  %v189_v16 = vld [vmem:[#allocation2 + $0x20] sm:$0xff]  ;;  %s977_s13 = smov (!%p175_p2, %s872_s13), 1 }
  0x2e   : > { %742 = vmatpush3.bf16.msra.mxu1 %v741_v9  ;;  %731 = vmatprep.subr.bf16.mxu0 %v843_v0  ;;  %v744_v13 = vpack.c.bf16 %v188_v11, %v187_v10  ;;  %v190_v17 = vld [vmem:[#allocation2 + $0x28] sm:$0xff]  ;;  %v735_v18 = vpack.c.bf16 %v201_v15, %v200_v14  ;;  %v202_v20 = vld [vmem:[#allocation2 + $0x70] sm:$0xff]  ;;  %v203_v21 = vld [vmem:[#allocation2 + $0x78] sm:$0xff]  ;;  %s615_s30 = sshll.u32 %s977_s13, 4  ;;  %s604_s7 = sshll.u32 %s977_s13, 2 }
  0x2f   : > { %743 = vmatprep.subr.bf16.mxu1 %v843_v0  ;;  %v747_v19 = vpack.c.bf16 %v190_v17, %v189_v16  ;;  %v191_v22 = vld [vmem:[#allocation2 + $0x30] sm:$0xff]  ;;  %v192_v23 = vld [vmem:[#allocation2 + $0x38] sm:$0xff]  ;;  %v738_v24 = vpack.c.bf16 %v203_v21, %v202_v20  ;;  %s932_s6 = scalar_lea.vmem %s965_s0, %s615_s30  ;;  %v354_v26 = vld [vmem:[#allocation2 + $0x80] sm:$0xff]  ;;  %s183_s14 = scalar_lea.vmem %s968_s3, %s604_s7 }
  0x30   : > { %v750_v25 = vpack.c.bf16 %v192_v23, %v191_v22  ;;  %v355_v27 = vld [vmem:[#allocation2 + $0x88] sm:$0xff]  ;;  %v439_v28 = vld [vmem:[#allocation2 + $0xc0] sm:$0xff]  ;;  %v356_v34 = vld [vmem:[#allocation2 + $0x90] sm:$0xff] }
  0x31   : > { %733 = vmatpush3.bf16.msra.mxu0 %v732_v12  ;;  %v440_v29 = vld [vmem:[#allocation2 + $0xc8] sm:$0xff]  ;;  %v605_v30 = vld [vmem:[%s932_s6 + $0x4] sm:$0xf]  ;;  %v753_v31 = vpack.c.bf16 %v355_v27, %v354_v26  ;;  %v184_v32 = vld [vmem:[%s932_s6] sm:$0xf] }
  0x32   : > { %745 = vmatpush3.bf16.msra.mxu1 %v744_v13  ;;  %734 = vmatprep.subr.bf16.mxu0 %v843_v0  ;;  %v765_v33 = vpack.c.bf16 %v440_v29, %v439_v28  ;;  %v357_v35 = vld [vmem:[#allocation2 + $0x98] sm:$0xff]  ;;  %v441_v36 = vld [vmem:[#allocation2 + $0xd0] sm:$0xff]  ;;  %v358_v40 = vld [vmem:[#allocation2 + $0xa0] sm:$0xff] }
  0x33   : > { %746 = vmatprep.subr.bf16.mxu1 %v843_v0  ;;  %v442_v37 = vld [vmem:[#allocation2 + $0xd8] sm:$0xff]  ;;  %v756_v38 = vpack.c.bf16 %v357_v35, %v356_v34  ;;  %v359_v41 = vld [vmem:[#allocation2 + $0xa8] sm:$0xff]  ;;  %v443_v42 = vld [vmem:[#allocation2 + $0xe0] sm:$0xff] }
  0x34   : > { %v768_v39 = vpack.c.bf16 %v442_v37, %v441_v36  ;;  %v444_v43 = vld [vmem:[#allocation2 + $0xe8] sm:$0xff]  ;;  %v759_v44 = vpack.c.bf16 %v359_v41, %v358_v40  ;;  %v360_v46 = vld [vmem:[#allocation2 + $0xb0] sm:$0xff]  ;;  %v361_v47 = vld [vmem:[#allocation2 + $0xb8] sm:$0xff] }
  0x35   : > { %736 = vmatpush3.bf16.msra.mxu0 %v735_v18  ;;  %v771_v45 = vpack.c.bf16 %v444_v43, %v443_v42  ;;  %v445_v48 = vld [vmem:[#allocation2 + $0xf0] sm:$0xff]  ;;  %v446_v49 = vld [vmem:[#allocation2 + $0xf8] sm:$0xff]  ;;  %v762_v50 = vpack.c.bf16 %v361_v47, %v360_v46  ;;  %v608_v52 = vld [vmem:[%s932_s6 + $0x8] sm:$0xf] }
  0x36   : > { %748 = vmatpush3.bf16.msra.mxu1 %v747_v19  ;;  %737 = vmatprep.subr.bf16.mxu0 %v843_v0  ;;  %v774_v51 = vpack.c.bf16 %v446_v49, %v445_v48  ;;  %v610_v53 = vld [vmem:[%s932_s6 + $0xc] sm:$0xf]  ;;  %v612_v63 = vld [vmem:[%s967_s2] ss:$0 sm:$0xff] }
  0x37   : > { %749 = vmatprep.subr.bf16.mxu1 %v843_v0 }
  0x39   : > { %739 = vmatpush3.bf16.msra.mxu0 %v738_v24 }
  0x3a   : > { %751 = vmatpush3.bf16.msra.mxu1 %v750_v25  ;;  %752 = vmatprep.subr.bf16.mxu0 %v843_v0 }
  0x3b   : > { %764 = vmatprep.subr.bf16.mxu1 %v843_v0 }
  0x3c   : > { %669 = vmatmul.mubr.msk.f32.vlgmr.msra.gmra.mrb[0].mxu0 %vm204_vm1, %v605_v30 }
  0x3d   : > { %688 = vmatmul.mubr.msk.f32.vlgmr.msra.gmra.mrb[0].mxu1 %vm204_vm1, %v184_v32  ;;  %754 = vmatpush3.bf16.msra.mxu0 %v753_v31 }
  0x3e   : > { %766 = vmatpush3.bf16.msra.mxu1 %v765_v33  ;;  %755 = vmatprep.subr.bf16.mxu0 %v843_v0 }
  0x3f   : > { %767 = vmatprep.subr.bf16.mxu1 %v843_v0  ;;  %706 = vmatprep.mubr.msk.f32.mxu0 %vm844_vm0, %v845_v1 }
  0x40   : > { %725 = vmatprep.mubr.msk.f32.mxu1 %vm844_vm0, %v845_v1 }
  0x41   : > { %757 = vmatpush3.bf16.msra.mxu0 %v756_v38 }
  0x42   : > { %769 = vmatpush3.bf16.msra.mxu1 %v768_v39  ;;  %758 = vmatprep.subr.bf16.mxu0 %v843_v0 }
  0x43   : > { %770 = vmatprep.subr.bf16.mxu1 %v843_v0 }
  0x45   : > { %760 = vmatpush3.bf16.msra.mxu0 %v759_v44 }
  0x46   : > { %772 = vmatpush3.bf16.msra.mxu1 %v771_v45  ;;  %761 = vmatprep.subr.bf16.mxu0 %v843_v0 }
  0x47   : > { %773 = vmatprep.subr.bf16.mxu1 %v843_v0 }
  0x49   : > { %763 = vmatpush3.bf16.msra.mxu0 %v762_v50 }
  0x4a   : > { %775 = vmatpush3.bf16.msra.mxu1 %v774_v51 }
  0x4c   : > { %707 = vmatmul.mubr.msk.f32.vlgmr.msra.gmra.mrb[2].mxu0 %vm204_vm1, %v608_v52 }
  0x4d   : > { %726 = vmatmul.mubr.msk.f32.vlgmr.msra.gmra.mrb[2].mxu1 %vm204_vm1, %v610_v53 }
 0x10f   : > { %v274_v54 = vpop.f32.mrb[0].mxu0 }
 0x110   : > { %v670_v55 = vpop.f32.mrb[1].mxu0  ;;  %v347_v56 = vpop.f32.mrb[0].mxu1 }
 0x111   : > { %v348_v57 = vadd.f32 %v347_v56, %v274_v54  ;;  %v689_v58 = vpop.f32.mrb[1].mxu1 }
 0x11f   : > { %v431_v59 = vpop.f32.mrb[2].mxu0 }
 0x120   : > { %v435_v60 = vadd.f32 %v431_v59, %v348_v57  ;;  %v708_v61 = vpop.f32.mrb[3].mxu0  ;;  %v516_v62 = vpop.f32.mrb[2].mxu1 }
 0x121   : > { %v727_v0 = vpop.f32.mrb[3].mxu1 }
 0x122   : > { %v520_v1 = vadd.f32 %v516_v62, %v435_v60 }
 0x124   : > { %v528_v2 = vadd.f32 %v612_v63, %v520_v1 }
 0x126   : > { %529 = vst [vmem:[%s183_s14] sm:$0xf] %v528_v2 }
 0x127 PF: > { %s14_s12 = sadd.s32 1, %s838_s12  }
 0x128   : > { %p11_p3 = scmp.ge.s32.totalorder %s14_s12, 4  }
 0x12a   :  { %13 = sbr.rel (!%p11_p3) target bundleno = 1 (0x1), region = 73 }
 0x131   :  { %549 = vsyncpa [#allocation3], 1 }
 0x132   :  { %551 = vsyncpa [#allocation3 + $0x1], 1 }

</bundles_post_ra>
